<compile_context>
chip_gen: v6e
topology: v6e:2x2x1
jax: 0.10.0
libtpu: 0.0.40
codegen_flags: <defaults>
</compile_context>

<pallas_src>
import math
from functools import partial

import jax
import jax.numpy as jnp
import numpy as np
from jax import lax
from jax.experimental import pallas as pl
from jax.experimental.pallas import tpu as pltpu

_VMEM_LIMIT = 64 * 1024 * 1024


def _pick_tile(dim, pref, unit):
    """Largest multiple of `unit` that divides `dim` and is <= pref, else full dim."""
    t = (pref // unit) * unit
    while t >= unit:
        if dim % t == 0:
            return t
        t -= unit
    return dim


# ---------------------------------------------------------------------------
# Kernel 1: tiled linear  y = x @ Wt (+ bias)   grid = (rows, N, K)
# ---------------------------------------------------------------------------
def _make_linear_kernel(has_bias):
    def kernel(x_ref, w_ref, *rest):
        if has_bias:
            b_ref, o_ref, acc_ref = rest
        else:
            o_ref, acc_ref = rest

        @pl.when(pl.program_id(2) == 0)
        def _():
            acc_ref[...] = jnp.zeros(acc_ref.shape, acc_ref.dtype)

        acc_ref[...] += jnp.dot(x_ref[...], w_ref[...],
                                preferred_element_type=jnp.float32)

        @pl.when(pl.program_id(2) == pl.num_programs(2) - 1)
        def _():
            acc = acc_ref[...]
            if has_bias:
                acc = acc + b_ref[...]
            o_ref[...] = acc.astype(o_ref.dtype)

    return kernel


def linear_pallas(x, w_t, bias=None):
    """x: [..., Din] @ w_t: [Din, Dout] (+ bias [1, Dout] f32) -> [..., Dout]."""
    orig_shape = x.shape
    din = orig_shape[-1]
    rows = int(np.prod(orig_shape[:-1]))
    x2 = x.reshape(rows, din)
    dout = w_t.shape[1]

    tm = _pick_tile(rows, 256, 16)
    tn = _pick_tile(dout, 512, 128)
    tk = _pick_tile(din, 512, 128)
    grid = (rows // tm, dout // tn, din // tk)

    in_specs = [
        pl.BlockSpec((tm, tk), lambda i, j, kk: (i, kk)),
        pl.BlockSpec((tk, tn), lambda i, j, kk: (kk, j)),
    ]
    args = [x2, w_t]
    if bias is not None:
        in_specs.append(pl.BlockSpec((1, tn), lambda i, j, kk: (0, j)))
        args.append(bias)

    out = pl.pallas_call(
        _make_linear_kernel(bias is not None),
        out_shape=jax.ShapeDtypeStruct((rows, dout), x.dtype),
        grid=grid,
        in_specs=in_specs,
        out_specs=pl.BlockSpec((tm, tn), lambda i, j, kk: (i, j)),
        scratch_shapes=[pltpu.VMEM((tm, tn), jnp.float32)],
        compiler_params=pltpu.CompilerParams(
            dimension_semantics=("parallel", "parallel", "arbitrary"),
            vmem_limit_bytes=_VMEM_LIMIT,
        ),
    )(*args)
    return out.reshape(*orig_shape[:-1], dout)


# ---------------------------------------------------------------------------
# Kernel 2: flash attention, heads selected via column-block index_maps
#   grid = (bs, n_heads, M-tiles, KV-tiles); KV axis is the online-softmax loop
# ---------------------------------------------------------------------------
def _make_flash_kernel(has_mask):
    def kernel(q_ref, k_ref, v_ref, *rest):
        if has_mask:
            mask_ref, o_ref, m_sc, l_sc, acc_sc = rest
        else:
            o_ref, m_sc, l_sc, acc_sc = rest

        kv = pl.program_id(3)

        @pl.when(kv == 0)
        def _():
            m_sc[...] = jnp.full(m_sc.shape, -jnp.inf, m_sc.dtype)
            l_sc[...] = jnp.zeros(l_sc.shape, l_sc.dtype)
            acc_sc[...] = jnp.zeros(acc_sc.shape, acc_sc.dtype)

        # (TM, H) x (TKV, H)^T -> (TM, TKV), bf16 operands, f32 accumulation.
        # 1/sqrt(d_k) is already folded into Wq.
        s = lax.dot_general(q_ref[0], k_ref[0],
                            dimension_numbers=(((1,), (1,)), ((), ())),
                            preferred_element_type=jnp.float32)
        if has_mask:
            s = s + mask_ref[0]          # additive bias, broadcasts (1|TM, TKV)

        m_prev = m_sc[...]
        m_new = jnp.maximum(m_prev, jnp.max(s, axis=-1, keepdims=True))
        alpha = jnp.exp(m_prev - m_new)
        p = jnp.exp(s - m_new)                       # f32
        l_sc[...] = alpha * l_sc[...] + jnp.sum(p, axis=-1, keepdims=True)
        acc_sc[...] = alpha * acc_sc[...] + jnp.dot(
            p.astype(v_ref.dtype), v_ref[0], preferred_element_type=jnp.float32)
        m_sc[...] = m_new

        @pl.when(kv == pl.num_programs(3) - 1)
        def _():
            inv_l = pl.reciprocal(l_sc[...], approx=True)
            o_ref[0] = (acc_sc[...] * inv_l).astype(o_ref.dtype)

    return kernel


def flash_attention(q, k, v, mask_add, n_heads, head_size,
                    q_hoff=0, k_hoff=0, v_hoff=0):
    """q: [bs, M, *], k/v: [bs, N, *]; head h of q/k/v is the column block
    (q_hoff + h) / (k_hoff + h) / (v_hoff + h) of width head_size.
    Returns [bs, M, n_heads * head_size] (heads already merged)."""
    bs, M, _ = q.shape
    N = k.shape[1]
    E = n_heads * head_size

    TM = _pick_tile(M, 256, 16)
    TKV = _pick_tile(N, 512, 128)
    grid = (bs, n_heads, M // TM, N // TKV)
    has_mask = mask_add is not None

    in_specs = [
        pl.BlockSpec((1, TM, head_size), lambda b, h, i, kv: (b, i, q_hoff + h)),
        pl.BlockSpec((1, TKV, head_size), lambda b, h, i, kv: (b, kv, k_hoff + h)),
        pl.BlockSpec((1, TKV, head_size), lambda b, h, i, kv: (b, kv, v_hoff + h)),
    ]
    args = [q, k, v]
    if has_mask:
        Mm = mask_add.shape[1]
        m_blk = TM if Mm != 1 else 1
        in_specs.append(pl.BlockSpec(
            (1, m_blk, TKV),
            lambda b, h, i, kv: (b, i if Mm != 1 else 0, kv)))
        args.append(mask_add)

    return pl.pallas_call(
        _make_flash_kernel(has_mask),
        out_shape=jax.ShapeDtypeStruct((bs, M, E), q.dtype),
        grid=grid,
        in_specs=in_specs,
        out_specs=pl.BlockSpec((1, TM, head_size), lambda b, h, i, kv: (b, i, h)),
        scratch_shapes=[
            pltpu.VMEM((TM, 1), jnp.float32),          # running max
            pltpu.VMEM((TM, 1), jnp.float32),          # running sum
            pltpu.VMEM((TM, head_size), jnp.float32),  # output accumulator
        ],
        compiler_params=pltpu.CompilerParams(
            dimension_semantics=("parallel", "parallel", "parallel", "arbitrary"),
            vmem_limit_bytes=_VMEM_LIMIT,
        ),
    )(*args)


# ---------------------------------------------------------------------------
# Module wrapper
# ---------------------------------------------------------------------------
class MultiHeadAttentionPallas:
    def __init__(self, input_size, output_size, n_heads, attn_dropout, key,
                 param_dtype=jnp.bfloat16):
        assert output_size % n_heads == 0
        self.n_heads = n_heads
        self.head_size = output_size // n_heads
        # TPU lane constraint for the per-head column blocks used by the kernel.
        assert self.head_size % 128 == 0 or n_heads == 1, (
            "head_size must be a multiple of 128 (or n_heads == 1)")
        self.output_size = output_size
        self.input_size = input_size
        self.compute_dtype = param_dtype
        self.p_attn = None

        keys = jax.random.split(key, 5)
        bound_in = 1.0 / math.sqrt(input_size)
        bound_out = 1.0 / math.sqrt(output_size)
        scale = 1.0 / math.sqrt(self.head_size)

        def u(k_, shape, bound):
            return jax.random.uniform(k_, shape, jnp.float32, -bound, bound)

        # torch weight layout is [out, in]; stored transposed [in, out] for x @ Wt.
        # 1/sqrt(d_k) folded into Wq (mathematically identical, free at runtime).
        self.wq_t = (u(keys[0], (input_size, output_size), bound_in) * scale
                     ).astype(param_dtype)
        self.wk_t = u(keys[1], (input_size, output_size), bound_in).astype(param_dtype)
        self.wv_t = u(keys[2], (input_size, output_size), bound_in).astype(param_dtype)
        # fused QKV weight for the self-attention fast path (x read once).
        self.wqkv_t = jnp.concatenate([self.wq_t, self.wk_t, self.wv_t], axis=1)
        self.wo_t = u(keys[3], (output_size, output_size), bound_out).astype(param_dtype)
        self.bo = u(keys[4], (1, output_size), bound_out)          # f32 bias

    def __call__(self, q, k, v, mask=None):
        cd = self.compute_dtype
        nh, hs = self.n_heads, self.head_size

        if (q is k) and (k is v):
            # Self-attention fast path: one fused (S, Din) x (Din, 3*Dout) matmul;
            # the q/k/v + head selection happens via column-offset index_maps
            # inside the attention kernel (no slicing / copies).
            qkv = linear_pallas(q.astype(cd), self.wqkv_t)    # [bs, m, 3*E]
            qp = kp = vp = qkv
            k_off, v_off = nh, 2 * nh
        else:
            qp = linear_pallas(q.astype(cd), self.wq_t)       # [bs, m, E]
            kp = linear_pallas(k.astype(cd), self.wk_t)       # [bs, n, E]
            vp = linear_pallas(v.astype(cd), self.wv_t)       # [bs, n, E]
            k_off = v_off = 0

        if mask is None:
            mask_add = None                                   # mask-free kernel variant
        else:
            # additive bias, kept at [bs, 1, n] / [bs, m, n] (broadcast in-kernel)
            mask_add = jnp.where(mask == 0, jnp.float32(-1e9), jnp.float32(0.0))

        z = flash_attention(qp, kp, vp, mask_add, nh, hs,
                            k_hoff=k_off, v_hoff=v_off)       # [bs, m, E], heads merged

        # TODO(synk): attn_dropout not applied; p_attn not materialized (flash softmax).
        self.p_attn = None

        return linear_pallas(z, self.wo_t, self.bo)           # [bs, m, out_size]


# ---------------------------------------------------------------------------
# Pure-JAX reference (mirrors the torch math and the kernel's precision points)
# ---------------------------------------------------------------------------
def reference_forward(mha, q, k, v, mask=None):
    cd = mha.compute_dtype
    f32 = jnp.float32
    bs, m, _ = q.shape
    n = k.shape[1]
    nh, hs = mha.n_heads, mha.head_size

    qp = (q.astype(cd).astype(f32) @ mha.wq_t.astype(f32)).astype(cd)
    kp = (k.astype(cd).astype(f32) @ mha.wk_t.astype(f32)).astype(cd)
    vp = (v.astype(cd).astype(f32) @ mha.wv_t.astype(f32)).astype(cd)

    qh = qp.reshape(bs, m, nh, hs).transpose(0, 2, 1, 3).astype(f32)
    kh = kp.reshape(bs, n, nh, hs).transpose(0, 2, 1, 3).astype(f32)
    vh = vp.reshape(bs, n, nh, hs).transpose(0, 2, 1, 3).astype(f32)

    # 1/sqrt(d_k) is already folded into wq_t, so no extra scaling here.
    scores = jnp.einsum("bhmd,bhnd->bhmn", qh, kh)
    if mask is not None:
        scores = jnp.where(mask[:, None] == 0, -1e9, scores)
    p = jax.nn.softmax(scores, axis=-1)
    z = jnp.einsum("bhmn,bhnd->bhmd", p.astype(cd).astype(f32), vh)
    z = z.transpose(0, 2, 1, 3).reshape(bs, m, mha.output_size).astype(cd).astype(f32)
    return z @ mha.wo_t.astype(f32) + mha.bo[0]


if __name__ == "__main__":
    key = jax.random.PRNGKey(0)
    kq, kk_, kv_, kmask, kparams = jax.random.split(key, 5)

    bs, m, n = 2, 8, 8
    input_size, output_size, n_heads = 32, 256, 2   # head_size = 128 (lane-aligned)

    q = jax.random.normal(kq, (bs, m, input_size), jnp.float32)
    k = jax.random.normal(kk_, (bs, n, input_size), jnp.float32)
    v = jax.random.normal(kv_, (bs, n, input_size), jnp.float32)
    mask = (jax.random.uniform(kmask, (bs, 1, n)) > 0.3).astype(jnp.int32)

    mha = MultiHeadAttentionPallas(input_size, output_size, n_heads,
                                   attn_dropout=0.0, key=kparams)

    # general (cross-attention) path with mask
    out = mha(q, k, v, mask)
    jax.block_until_ready(out)
    ref = reference_forward(mha, q, k, v, mask)
    np.testing.assert_allclose(np.asarray(out.astype(jnp.float32)),
                               np.asarray(ref), rtol=3e-2, atol=3e-2)

    # mask=None path (mask-free kernel variant)
    out2 = mha(q, k, v, None)
    jax.block_until_ready(out2)
    ref2 = reference_forward(mha, q, k, v, None)
    np.testing.assert_allclose(np.asarray(out2.astype(jnp.float32)),
                               np.asarray(ref2), rtol=3e-2, atol=3e-2)

    # self-attention fast path (fused QKV projection, zero-copy head/qkv select)
    out3 = mha(q, q, q, mask)
    jax.block_until_ready(out3)
    ref3 = reference_forward(mha, q, q, q, mask)
    np.testing.assert_allclose(np.asarray(out3.astype(jnp.float32)),
                               np.asarray(ref3), rtol=3e-2, atol=3e-2)

    print("KERNEL_OK")
</pallas_src>

<mosaic_0001>
module attributes {stable_mosaic.version = 11 : i64} {
  func.func @kernel(%arg0: i32, %arg1: i32, %arg2: i32, %arg3: memref<16x32xbf16, #tpu.memory_space<vmem>>, %arg4: memref<32x256xbf16, #tpu.memory_space<vmem>>, %arg5: memref<16x256xbf16, #tpu.memory_space<vmem>>, %arg6: memref<16x256xf32, #tpu.memory_space<vmem>>) attributes {dimension_semantics = [#tpu.dimension_semantics<parallel>, #tpu.dimension_semantics<parallel>, #tpu.dimension_semantics<arbitrary>], iteration_bounds = array<i64: 1, 1, 1>, scalar_prefetch = 0 : i64, scratch_operands = 1 : i64, tpu.core_type = #tpu.core_type<tc>, window_params = [{transform_indices = @transform_0, window_bounds = array<i64: 16, 32>}, {transform_indices = @transform_1, window_bounds = array<i64: 32, 256>}, {transform_indices = @transform_2, window_bounds = array<i64: 16, 256>}]} {
    %c0_i32 = arith.constant 0 : i32
    %0 = arith.cmpi eq, %arg2, %c0_i32 : i32
    %1 = arith.extui %0 : i1 to i32
    %c0_i32_0 = arith.constant 0 : i32
    %2 = arith.cmpi ne, %1, %c0_i32_0 : i32
    scf.if %2 {
      %cst_10 = arith.constant 0.000000e+00 : f32
      %12 = vector.broadcast %cst_10 : f32 to vector<16x256xf32>
      %c0_11 = arith.constant 0 : index
      %c0_12 = arith.constant 0 : index
      %13 = vector.load %arg6[%c0_11, %c0_12] : memref<16x256xf32, #tpu.memory_space<vmem>>, vector<16x256xf32>
      tpu.vector_store %arg6[%c0_11, %c0_12], %12 {strides = array<i32>} : memref<16x256xf32, #tpu.memory_space<vmem>>, vector<16x256xf32>,
    } else {
    }
    %c0 = arith.constant 0 : index
    %c0_1 = arith.constant 0 : index
    %3 = vector.load %arg6[%c0, %c0_1] : memref<16x256xf32, #tpu.memory_space<vmem>>, vector<16x256xf32>
    %c0_2 = arith.constant 0 : index
    %c0_3 = arith.constant 0 : index
    %4 = vector.load %arg3[%c0_2, %c0_3] : memref<16x32xbf16, #tpu.memory_space<vmem>>, vector<16x32xbf16>
    %c0_4 = arith.constant 0 : index
    %c0_5 = arith.constant 0 : index
    %5 = vector.load %arg4[%c0_4, %c0_5] : memref<32x256xbf16, #tpu.memory_space<vmem>>, vector<32x256xbf16>
    %cst = arith.constant dense<0.000000e+00> : vector<16x256xf32>
    %6 = tpu.matmul %4, %5, %cst {dimension_numbers = #tpu.dot_dimension_numbers<[1], [0], [0], [1], [0, 0, 1, 1], [], []>} : vector<16x32xbf16>, vector<32x256xbf16>, vector<16x256xf32> -> vector<16x256xf32>
    %7 = arith.addf %3, %6 : vector<16x256xf32>
    %c0_6 = arith.constant 0 : index
    %c0_7 = arith.constant 0 : index
    %8 = vector.load %arg6[%c0_6, %c0_7] : memref<16x256xf32, #tpu.memory_space<vmem>>, vector<16x256xf32>
    tpu.vector_store %arg6[%c0_6, %c0_7], %7 {strides = array<i32>} : memref<16x256xf32, #tpu.memory_space<vmem>>, vector<16x256xf32>,
    %c0_i32_8 = arith.constant 0 : i32
    %9 = arith.cmpi eq, %arg2, %c0_i32_8 : i32
    %10 = arith.extui %9 : i1 to i32
    %c0_i32_9 = arith.constant 0 : i32
    %11 = arith.cmpi ne, %10, %c0_i32_9 : i32
    scf.if %11 {
      %c0_10 = arith.constant 0 : index
      %c0_11 = arith.constant 0 : index
      %12 = vector.load %arg6[%c0_10, %c0_11] : memref<16x256xf32, #tpu.memory_space<vmem>>, vector<16x256xf32>
      %13 = arith.truncf %12 : vector<16x256xf32> to vector<16x256xbf16>
      %c0_12 = arith.constant 0 : index
      %c0_13 = arith.constant 0 : index
      %14 = vector.load %arg5[%c0_12, %c0_13] : memref<16x256xbf16, #tpu.memory_space<vmem>>, vector<16x256xbf16>
      tpu.vector_store %arg5[%c0_12, %c0_13], %13 {strides = array<i32>} : memref<16x256xbf16, #tpu.memory_space<vmem>>, vector<16x256xbf16>,
    } else {
    }
    return
  }
  func.func @transform_0(%arg0: i32, %arg1: i32, %arg2: i32) -> (i32, i32) {
    %c0_i32 = arith.constant 0 : i32
    return %arg0, %arg2 : i32, i32
  }
  func.func @transform_1(%arg0: i32, %arg1: i32, %arg2: i32) -> (i32, i32) {
    %c0_i32 = arith.constant 0 : i32
    return %arg2, %arg1 : i32, i32
  }
  func.func @transform_2(%arg0: i32, %arg1: i32, %arg2: i32) -> (i32, i32) {
    %c0_i32 = arith.constant 0 : i32
    return %arg0, %arg1 : i32, i32
  }
}

</mosaic_0001>

<bundles_post_ra>
// kernel: tpu_custom_call.1
= control target key start
LH: loop header
LB: loop body
LE: loop exit
PB: predicated region body
PF: predicated region fallthrough
CT: control target
= control target key end

     0   :  { %7 = vsyncpa [#allocation4], 0  ;;  %s307_s0 = inlined_call_operand.hbm [shape: bf16[16,32], index: 0, kind: input, shape index: {}]   ;;  %s308_s1 = inlined_call_operand.hbm [shape: bf16[32,256], index: 1, kind: input, shape index: {}]   ;;  %s309_s2 = inlined_call_operand.hbm [shape: bf16[16,256], index: 2, kind: output, shape index: {}]  }
   0x1   :  { %8 = vsyncpa [#allocation7], 0 }
   0x2   :  { %9 = vsyncpa [#allocation5], 0  ;;  %s269_s9 = smov [#allocation3]  }
   0x3   :  { %s15_s10 = sshll.u32 %s269_s9, 4  ;;  %s16_s10 = int_to_ptr.vmem [resolvable:$true] %s15_s10 }
   0x4   :  { %s211_s11 = scalar_lea.vmem %s16_s10, 128  ;;  %p216_p1 = scmp.lt.s32.totalorder %s16_s10, %s16_s10 }
   0x5   :  { %p212_p0 = scmp.ne.s32.totalorder %s16_s10, %s211_s11  ;;  %p217_p2 = scmp.lt.s32.totalorder %s211_s11, %s211_s11 }
   0x7   :  { %p218_p3 = por %p217_p2, %p216_p1 }
   0x9   :  { %p219_p4 = pnand %p218_p3, %p212_p0 }
   0xb   :  { %222 = shalt.err (!%p219_p4)
}
   0xc   :  { %s270_s12 = smov 64   ;;  %s271_s13 = smov 4  }
   0xd   :  { %21 = dma.hbm_to_vmem [thread:$0]  %s307_s0, 128, %s16_s10, [#allocation4], %s270_s12, %s270_s12, %s271_s13  }
   0xe   :  { %s272_s16 = smov [#allocation6]  }
   0xf   :  { %s27_s17 = sshll.u32 %s272_s16, 4  ;;  %s28_s17 = int_to_ptr.vmem [resolvable:$true] %s27_s17 }
  0x10   :  { %s231_s18 = scalar_lea.vmem %s28_s17, 512  ;;  %p236_p6 = scmp.lt.s32.totalorder %s28_s17, %s28_s17 }
  0x11   :  { %p232_p5 = scmp.ne.s32.totalorder %s28_s17, %s231_s18  ;;  %p237_p7 = scmp.lt.s32.totalorder %s231_s18, %s231_s18 }
  0x13   :  { %p238_p8 = por %p237_p7, %p236_p6 }
  0x15   :  { %p239_p9 = pnand %p238_p8, %p232_p5 }
  0x17   :  { %242 = shalt.err (!%p239_p9)
}
  0x18   :  { %s273_s19 = smov 128   ;;  %s274_s20 = smov 8  }
  0x19   :  { %33 = dma.hbm_to_vmem [thread:$0]  %s308_s1, 512, %s28_s17, [#allocation7], %s273_s19, %s273_s19, %s274_s20  }
  0x1a   :  { %263 = dma.done.wait [#allocation4], 128  }
  0x1b   :  { %264 = vsyncadd [#allocation4], 4294967168 }
  0x1c   :  { %265 = dma.done.wait [#allocation7], 512  }
  0x1d   :  { %266 = vsyncadd [#allocation7], 4294966784  ;;  %v275_v0 = vmov 0   ;;  %v196_v1 = vld [vmem:[#allocation6 + $0x14] ss:$8 sps:$4 sm:$0xff]   ;;  %vm84_vm0 = vcmask 261120  }
  0x1e   :  { %120 = vmatprep.mubr.bf16.mxu0 %v275_v0  ;;  %v198_v2 = vld [vmem:[#allocation6 + $0x10] ss:$8 sps:$4 sm:$0xff]   ;;  %100 = vmatprep.subr.bf16.mxu0 %v196_v1  ;;  %v199_v3 = vld [vmem:[#allocation6 + $0x4] ss:$8 sps:$4 sm:$0xff]   ;;  %v201_v4 = vld [vmem:[#allocation6] ss:$8 sps:$4 sm:$0xff]  }
  0x1f   :  { %101 = vmatpush1.bf16.msra.mxu0 %v198_v2  ;;  %v202_v5 = vld [vmem:[#allocation3] sm:$0xff]   ;;  %s276_s0 = smov [#allocation8]  }
  0x20   :  { %102 = vmatprep.subr.bf16.mxu0 %v199_v3  ;;  %s165_s1 = sshll.u32 %s276_s0, 4  ;;  %s166_s1 = int_to_ptr.vmem [resolvable:$true] %s165_s1 }
  0x21   :  { %s243_s23 = scalar_lea.vmem %s166_s1, 256  ;;  %p248_p11 = scmp.lt.s32.totalorder %s166_s1, %s166_s1 }
  0x22   :  { %p244_p10 = scmp.ne.s32.totalorder %s166_s1, %s243_s23  ;;  %p249_p12 = scmp.lt.s32.totalorder %s243_s23, %s243_s23 }
  0x23   :  { %103 = vmatpush1.bf16.msra.mxu0 %v201_v4 }
  0x24   :  { %p250_p13 = por %p249_p12, %p248_p11 }
  0x26   :  { %183 = vmatmul.mubr.msk.bf16.vlgmr.msra.gmra.mxu0 %vm84_vm0, %v202_v5  ;;  %p251_p0 = pnand %p250_p13, %p244_p10 }
  0xe6   :  { %v122_v6 = vpop.f32.mrf.mxu0 }
  0xe8   :  { %v124_v7 = vpop.f32.mrf.mxu0 }
  0xe9   :  { %v186_v8 = vpack.c.bf16 %v124_v7, %v122_v6 }
  0xea   :  { %v126_v9 = vpop.f32.mrf.mxu0 }
  0xeb   :  { %158 = vst [vmem:[#allocation8] sm:$0xff] %v186_v8 }
  0xec   :  { %v128_v10 = vpop.f32.mrf.mxu0 }
  0xed   :  { %v187_v11 = vpack.c.bf16 %v128_v10, %v126_v9 }
  0xef   :  { %159 = vst [vmem:[#allocation8 + $0x8] sm:$0xff] %v187_v11 }
  0xf0   :  { %254 = shalt.err (!%p251_p0)
}
  0xf1   :  { %171 = dma.vmem_to_hbm [thread:$0]  %s166_s1, 256, %s309_s2, [#allocation5], %s273_s19, %s273_s19, %s274_s20  }
  0xf2   :  { %267 = dma.done.wait [#allocation5], 256  }
  0xf3   :  { %268 = vsyncadd [#allocation5], 4294967040 }
  0xf4   :  { %175 = vsyncpa [#allocation4], 1 }
  0xf5   :  { %176 = vsyncpa [#allocation7], 1 }
  0xf6   :  { %177 = vsyncpa [#allocation5], 1 }

</bundles_post_ra>
